<compile_context>
chip_gen: v5e
topology: v5e:2x2
jax: 0.10.0
libtpu: 0.0.40
codegen_flags: <defaults>
</compile_context>

<pallas_src>
import math

import jax
import jax.numpy as jnp
from jax.experimental import pallas as pl
from jax.experimental.pallas import tpu as pltpu

_MAX_PERIOD = 10000.0


def _timestep_embedder_kernel(t_ref, freqs_ref, w1_ref, b1_ref, w2_ref, b2_ref,
                              out_ref):
    """Fused: t -> [cos(t*f) | sin(t*f)] -> Linear -> SiLU -> Linear."""
    n = out_ref.shape[0]
    freqs = freqs_ref[...]                                    # (1, half) f32

    # args[i, :] = t[i] * freqs.  t lives in SMEM, so each row is one
    # scalar-broadcast multiply; the (n, half) matrix is a sublane concat.
    args = jnp.concatenate([t_ref[i] * freqs for i in range(n)], axis=0)

    # [cos | sin] ordering, matching the PyTorch reference.
    sincos = jnp.concatenate([jnp.cos(args), jnp.sin(args)], axis=-1)

    # Linear -> SiLU -> Linear.  bf16 operands on the MXU, f32 accumulation,
    # f32 elementwise math.
    h = jnp.dot(sincos.astype(w1_ref.dtype), w1_ref[...],
                preferred_element_type=jnp.float32) + b1_ref[...]
    h = h * jax.nn.sigmoid(h)                                 # SiLU in f32
    out = jnp.dot(h.astype(w2_ref.dtype), w2_ref[...],
                  preferred_element_type=jnp.float32) + b2_ref[...]
    out_ref[...] = out.astype(out_ref.dtype)


class TimestepEmbedder:
    """JAX/Pallas port of the PyTorch TimestepEmbedder."""

    def __init__(self, hidden_size, frequency_embedding_size=256, *,
                 key, param_dtype=jnp.bfloat16):
        self.hidden_size = hidden_size
        self.frequency_embedding_size = frequency_embedding_size
        half = frequency_embedding_size // 2
        self._half = half

        # Precomputed constant: freqs row, (1, half) f32.
        self.freqs = jnp.exp(
            -math.log(_MAX_PERIOD)
            * jnp.arange(half, dtype=jnp.float32) / float(half)
        ).reshape(1, half)

        # Parameters stored once in final layout ([in, out], biases (1, out))
        # and final dtype -- no per-call astype/reshape in the hot path.
        k1, k2, k3, k4 = jax.random.split(key, 4)
        self.w1 = (jax.random.normal(k1, (frequency_embedding_size, hidden_size),
                                     jnp.float32) * 0.02).astype(param_dtype)
        self.b1 = (jax.random.normal(k2, (hidden_size,), jnp.float32)
                   * 0.02).reshape(1, hidden_size)
        self.w2 = (jax.random.normal(k3, (hidden_size, hidden_size),
                                     jnp.float32) * 0.02).astype(param_dtype)
        self.b2 = (jax.random.normal(k4, (hidden_size,), jnp.float32)
                   * 0.02).reshape(1, hidden_size)

        # Odd-dim case: the reference zero-pads the embedding by one column,
        # which contributes nothing to emb @ w1.  Equivalent (and cheaper):
        # drop the last weight row and never build the pad.
        self._w1_mm = self.w1[: 2 * half]                     # (2*half, H)

        self._forward = jax.jit(self._forward_impl, static_argnames=("dtype",))

    def _forward_impl(self, t, *, dtype):
        n = t.shape[0]
        H = self.hidden_size
        f = 2 * self._half
        smem = pl.BlockSpec(memory_space=pltpu.MemorySpace.SMEM)
        vmem = pl.BlockSpec(memory_space=pltpu.MemorySpace.VMEM)
        cost = pl.CostEstimate(
            flops=2 * n * (f * H + H * H) + 8 * n * H,
            transcendentals=n * (f + H),
            bytes_accessed=2 * (f * H + H * H) + 8 * H + 4 * (n + self._half + n * H),
        )
        return pl.pallas_call(
            _timestep_embedder_kernel,
            out_shape=jax.ShapeDtypeStruct((n, H), dtype),
            in_specs=[smem, vmem, vmem, vmem, vmem, vmem],
            out_specs=vmem,
            cost_estimate=cost,
        )(t.astype(jnp.float32), self.freqs, self._w1_mm, self.b1,
          self.w2, self.b2)

    def forward(self, t, dtype=jnp.float32):
        return self._forward(t, dtype=dtype)


# ------------------------- pure-JAX reference -------------------------------
def _ref_forward(mod, t, dtype):
    tf = t.astype(jnp.float32)
    dim = mod.frequency_embedding_size
    half = dim // 2
    freqs = jnp.exp(-math.log(_MAX_PERIOD)
                    * jnp.arange(half, dtype=jnp.float32) / float(half))
    args = tf[:, None] * freqs[None, :]
    emb = jnp.concatenate([jnp.cos(args), jnp.sin(args)], axis=-1)
    if dim % 2:
        emb = jnp.concatenate([emb, jnp.zeros_like(emb[:, :1])], axis=-1)
    h = emb @ mod.w1.astype(jnp.float32) + mod.b1
    h = h * jax.nn.sigmoid(h)
    out = h @ mod.w2.astype(jnp.float32) + mod.b2
    return out.astype(dtype)


if __name__ == "__main__":
    key = jax.random.PRNGKey(0)
    k_mod, k_t = jax.random.split(key)

    batch_size = 2
    hidden_size = 384

    module = TimestepEmbedder(hidden_size, key=k_mod)
    t = jax.random.uniform(k_t, (batch_size,), jnp.float32, 0.0, 1000.0)

    out = module.forward(t, dtype=jnp.float32)
    out = jax.block_until_ready(out)

    assert out.shape == (batch_size, hidden_size), out.shape

    ref = _ref_forward(module, t, jnp.float32)
    max_err = float(jnp.max(jnp.abs(out - ref)))
    assert jnp.allclose(out, ref, rtol=2e-2, atol=2e-2), max_err

    print("KERNEL_OK")
</pallas_src>

<mosaic_0001>
module attributes {stable_mosaic.version = 11 : i64} {
  func.func @_timestep_embedder_kernel(%arg0: memref<2xf32, #tpu.memory_space<smem>>, %arg1: memref<1x128xf32, #tpu.memory_space<vmem>>, %arg2: memref<256x384xbf16, #tpu.memory_space<vmem>>, %arg3: memref<1x384xf32, #tpu.memory_space<vmem>>, %arg4: memref<384x384xbf16, #tpu.memory_space<vmem>>, %arg5: memref<1x384xf32, #tpu.memory_space<vmem>>, %arg6: memref<2x384xf32, #tpu.memory_space<vmem>>) attributes {dimension_semantics = [], scalar_prefetch = 0 : i64, scratch_operands = 0 : i64, tpu.core_type = #tpu.core_type<tc>} {
    %c0 = arith.constant 0 : index
    %c0_0 = arith.constant 0 : index
    %0 = vector.load %arg1[%c0, %c0_0] : memref<1x128xf32, #tpu.memory_space<vmem>>, vector<1x128xf32>
    %c0_1 = arith.constant 0 : index
    %1 = memref.load %arg0[%c0_1] : memref<2xf32, #tpu.memory_space<smem>>
    %2 = vector.broadcast %1 : f32 to vector<1x128xf32>
    %3 = arith.mulf %2, %0 : vector<1x128xf32>
    %c1 = arith.constant 1 : index
    %4 = memref.load %arg0[%c1] : memref<2xf32, #tpu.memory_space<smem>>
    %5 = vector.broadcast %4 : f32 to vector<1x128xf32>
    %6 = arith.mulf %5, %0 : vector<1x128xf32>
    %7 = tpu.concatenate %3, %6 in 0 : vector<1x128xf32>, vector<1x128xf32> -> vector<2x128xf32>
    %8 = math.cos %7 : vector<2x128xf32>
    %9 = math.sin %7 : vector<2x128xf32>
    %10 = tpu.concatenate %8, %9 in 1 : vector<2x128xf32>, vector<2x128xf32> -> vector<2x256xf32>
    %11 = arith.truncf %10 : vector<2x256xf32> to vector<2x256xbf16>
    %c0_2 = arith.constant 0 : index
    %c0_3 = arith.constant 0 : index
    %12 = vector.load %arg2[%c0_2, %c0_3] : memref<256x384xbf16, #tpu.memory_space<vmem>>, vector<256x384xbf16>
    %cst = arith.constant dense<0.000000e+00> : vector<2x384xf32>
    %13 = tpu.matmul %11, %12, %cst {dimension_numbers = #tpu.dot_dimension_numbers<[1], [0], [0], [1], [0, 0, 1, 1], [], []>} : vector<2x256xbf16>, vector<256x384xbf16>, vector<2x384xf32> -> vector<2x384xf32>
    %c0_4 = arith.constant 0 : index
    %c0_5 = arith.constant 0 : index
    %14 = vector.load %arg3[%c0_4, %c0_5] : memref<1x384xf32, #tpu.memory_space<vmem>>, vector<1x384xf32>
    %15 = vector.broadcast %14 : vector<1x384xf32> to vector<2x384xf32>
    %16 = arith.addf %13, %15 : vector<2x384xf32>
    %17 = arith.negf %16 : vector<2x384xf32>
    %18 = math.exp %17 : vector<2x384xf32>
    %cst_6 = arith.constant 1.000000e+00 : f32
    %19 = vector.broadcast %cst_6 : f32 to vector<2x384xf32>
    %20 = arith.addf %19, %18 : vector<2x384xf32>
    %21 = arith.divf %19, %20 : vector<2x384xf32>
    %22 = arith.mulf %16, %21 : vector<2x384xf32>
    %23 = arith.truncf %22 : vector<2x384xf32> to vector<2x384xbf16>
    %c0_7 = arith.constant 0 : index
    %c0_8 = arith.constant 0 : index
    %24 = vector.load %arg4[%c0_7, %c0_8] : memref<384x384xbf16, #tpu.memory_space<vmem>>, vector<384x384xbf16>
    %cst_9 = arith.constant dense<0.000000e+00> : vector<2x384xf32>
    %25 = tpu.matmul %23, %24, %cst_9 {dimension_numbers = #tpu.dot_dimension_numbers<[1], [0], [0], [1], [0, 0, 1, 1], [], []>} : vector<2x384xbf16>, vector<384x384xbf16>, vector<2x384xf32> -> vector<2x384xf32>
    %c0_10 = arith.constant 0 : index
    %c0_11 = arith.constant 0 : index
    %26 = vector.load %arg5[%c0_10, %c0_11] : memref<1x384xf32, #tpu.memory_space<vmem>>, vector<1x384xf32>
    %27 = vector.broadcast %26 : vector<1x384xf32> to vector<2x384xf32>
    %28 = arith.addf %25, %27 : vector<2x384xf32>
    %c0_12 = arith.constant 0 : index
    %c0_13 = arith.constant 0 : index
    %29 = vector.load %arg6[%c0_12, %c0_13] : memref<2x384xf32, #tpu.memory_space<vmem>>, vector<2x384xf32>
    tpu.vector_store %arg6[%c0_12, %c0_13], %28 {strides = array<i32>} : memref<2x384xf32, #tpu.memory_space<vmem>>, vector<2x384xf32>,
    return
  }
}

</mosaic_0001>

<bundles_post_ra>
// kernel: _forward_impl.1
= control target key start
LH: loop header
LB: loop body
LE: loop exit
PB: predicated region body
PF: predicated region fallthrough
CT: control target
= control target key end

     0   :  { %11 = vsyncpa [#allocation5], 0  ;;  %s2466_s0 = inlined_call_operand.hbm [shape: f32[2], index: 0, kind: input, shape index: {}]   ;;  %s2467_s1 = inlined_call_operand.hbm [shape: f32[1,128], index: 1, kind: input, shape index: {}]   ;;  %s2468_s2 = inlined_call_operand.hbm [shape: bf16[256,384], index: 2, kind: input, shape index: {}]   ;;  %s2469_s3 = inlined_call_operand.hbm [shape: f32[1,384], index: 3, kind: input, shape index: {}]   ;;  %s2470_s4 = inlined_call_operand.hbm [shape: bf16[384,384], index: 4, kind: input, shape index: {}]   ;;  %s2471_s5 = inlined_call_operand.vmem [shape: f32[1,384], index: 5, kind: input, shape index: {}]   ;;  %s2472_s6 = inlined_call_operand.hbm [shape: f32[2,384], index: 6, kind: output, shape index: {}]  }
   0x1   :  { %12 = vsyncpa [#allocation3], 0 }
   0x2   :  { %13 = vsyncpa [#allocation8], 0 }
   0x3   :  { %14 = vsyncpa [#allocation11], 0  ;;  %s40_s23 = sshll.u32 %s2468_s2, 4  ;;  %s41_s23 = int_to_ptr.hbm [resolvable:$true] %s40_s23 }
   0x4   :  { %15 = vsyncpa [#allocation4], 0  ;;  %s2303_s24 = smov [#allocation7]   ;;  %s21_s28 = sshll.u32 %s2466_s0, 4  ;;  %s22_s28 = int_to_ptr.hbm [resolvable:$true] %s21_s28 }
   0x5   :  { %s42_s25 = sshll.u32 %s2303_s24, 4  ;;  %s2304_s29 = smov 192   ;;  %s43_s25 = int_to_ptr.vmem [resolvable:$true] %s42_s25 }
   0x6   :  { %s2305_s30 = smov 12   ;;  %s2306_s7 = smov [#allocation2]  }
   0x7   :  { %48 = dma.hbm_to_vmem [thread:$0]  %s41_s23, 6144, %s43_s25, [#allocation8], %s2304_s29, %s2304_s29, %s2305_s30  }
   0x8   :  { %24 = dma.hbm_to_smem %s22_s28, 16, %s2306_s7, [#allocation5]  }
   0x9   :  { %s30_s10 = sshll.u32 %s2467_s1, 4  ;;  %s2307_s2 = smov [#allocation6]   ;;  %s31_s10 = int_to_ptr.hbm [resolvable:$true] %s30_s10 }
   0xa   :  { %s32_s11 = sshll.u32 %s2307_s2, 4  ;;  %s54_s14 = sshll.u32 %s2469_s3, 4  ;;  %s33_s11 = int_to_ptr.vmem [resolvable:$true] %s32_s11  ;;  %s55_s14 = int_to_ptr.hbm [resolvable:$true] %s54_s14 }
   0xb   :  { %35 = dma.hbm_to_vmem [thread:$0]  %s31_s10, 16, %s33_s11, [#allocation3]  }
   0xc   :  { %s2308_s0 = smov [#allocation9]   ;;  %s64_s18 = sshll.u32 %s2470_s4, 4  ;;  %s65_s18 = int_to_ptr.hbm [resolvable:$true] %s64_s18 }
   0xd   :  { %s56_s15 = sshll.u32 %s2308_s0, 4  ;;  %s2309_s1 = smov [#allocation10]   ;;  %s57_s15 = int_to_ptr.vmem [resolvable:$true] %s56_s15 }
   0xe   :  { %59 = dma.hbm_to_vmem [thread:$0]  %s55_s14, 48, %s57_s15, [#allocation8]  }
   0xf   :  { %s66_s19 = sshll.u32 %s2309_s1, 4  ;;  %s67_s19 = int_to_ptr.vmem [resolvable:$true] %s66_s19 }
  0x10   :  { %72 = dma.hbm_to_vmem [thread:$0]  %s65_s18, 9216, %s67_s19, [#allocation11], %s2304_s29, %s2304_s29, %s2305_s30  }
  0x11   :  { %2293 = dma.done.wait [#allocation5], 16  }
  0x12   :  { %2294 = vsyncadd [#allocation5], 4294967280 }
  0x13   :  { %2295 = dma.done.wait [#allocation3], 16  }
  0x14   :  { %2296 = vsyncadd [#allocation3], 4294967280 }
  0x15   :  { %2297 = dma.done.wait [#allocation8], 6192  }
  0x16   :  { %2298 = vsyncadd [#allocation8], 4294961104 }
  0x17   :  { %2299 = dma.done.wait [#allocation11], 9216  }
  0x18   :  { %2300 = vsyncadd [#allocation11], 4294958080 }
  0x19   :  { %95 = sfence }
  0x1a   :  { %v1617_v0 = vld [vmem:[#allocation7 + $0xa8] sm:$0xf]  ;;  %v2036_v1 = vld [vmem:[#allocation7 + $0xb0] sm:$0xf0]  ;;  %v1605_v5 = vld [vmem:[#allocation7 + $0x90] sm:$0xf] }
  0x1b   :  { %v1713_v2 = vld [vmem:[#allocation7 + $0x168] sm:$0xf]  ;;  %v1618_v3 = vor.u32 %v2036_v1, %v1617_v0  ;;  %v2060_v4 = vld [vmem:[#allocation7 + $0x170] sm:$0xf0]  ;;  %v2033_v6 = vld [vmem:[#allocation7 + $0x98] sm:$0xf0] }
  0x1c   :  { %v1714_v7 = vor.u32 %v2060_v4, %v1713_v2  ;;  %v1701_v8 = vld [vmem:[#allocation7 + $0x150] sm:$0xf]  ;;  %v2057_v9 = vld [vmem:[#allocation7 + $0x158] sm:$0xf0]  ;;  %v1606_v10 = vor.u32 %v2033_v6, %v1605_v5  ;;  %v1593_v12 = vld [vmem:[#allocation7 + $0x78] sm:$0xf] }
  0x1d   :  { %747 = vmatpush.bf16.msra.mxu0 %v1618_v3  ;;  %v1702_v11 = vor.u32 %v2057_v9, %v1701_v8  ;;  %v2030_v13 = vld [vmem:[#allocation7 + $0x80] sm:$0xf0]  ;;  %v1689_v14 = vld [vmem:[#allocation7 + $0x138] sm:$0xf]  ;;  %v2035_v16 = vld [vmem:[#allocation7 + $0xac] sm:$0xf] }
  0x1e   :  { %760 = vmatpush.bf16.msra.mxu1 %v1714_v7  ;;  %v2054_v15 = vld [vmem:[#allocation7 + $0x140] sm:$0xf0]  ;;  %v1619_v17 = vld [vmem:[#allocation7 + $0xb4] sm:$0xf0]  ;;  %v2059_v19 = vld [vmem:[#allocation7 + $0x16c] sm:$0xf]  ;;  %v1594_v21 = vor.u32 %v2030_v13, %v1593_v12 }
  0x1f   :  { %v1622_v18 = vor.u32 %v2035_v16, %v1619_v17  ;;  %v1715_v20 = vld [vmem:[#allocation7 + $0x174] sm:$0xf0]  ;;  %v1581_v22 = vld [vmem:[#allocation7 + $0x60] sm:$0xf]  ;;  %v2027_v23 = vld [vmem:[#allocation7 + $0x68] sm:$0xf0]  ;;  %v1690_v25 = vor.u32 %v2054_v15, %v1689_v14 }
  0x20   :  { %v1718_v24 = vor.u32 %v2059_v19, %v1715_v20  ;;  %v2032_v26 = vld [vmem:[#allocation7 + $0x94] sm:$0xf]  ;;  %v1607_v27 = vld [vmem:[#allocation7 + $0x9c] sm:$0xf0]  ;;  %v2051_v30 = vld [vmem:[#allocation7 + $0x128] sm:$0xf0]  ;;  %v1582_v35 = vor.u32 %v2027_v23, %v1581_v22 }
  0x21   :  { %748 = vmatpush.bf16.msra.mxu0 %v1606_v10  ;;  %773 = vmatpush.bf16.msra.mxu2 %v1622_v18  ;;  %v2056_v28 = vld [vmem:[#allocation7 + $0x154] sm:$0xf]  ;;  %v1677_v29 = vld [vmem:[#allocation7 + $0x120] sm:$0xf]  ;;  %v1610_v31 = vor.u32 %v2032_v26, %v1607_v27  ;;  %v2029_v34 = vld [vmem:[#allocation7 + $0x7c] sm:$0xf] }
  0x22   :  { %761 = vmatpush.bf16.msra.mxu1 %v1702_v11  ;;  %786 = vmatpush.bf16.msra.mxu3 %v1718_v24  ;;  %v1703_v32 = vld [vmem:[#allocation7 + $0x15c] sm:$0xf0]  ;;  %v1595_v36 = vld [vmem:[#allocation7 + $0x84] sm:$0xf0]  ;;  %v2053_v37 = vld [vmem:[#allocation7 + $0x13c] sm:$0xf]  ;;  %v1678_v39 = vor.u32 %v2051_v30, %v1677_v29 }
  0x23   :  { %v1706_v33 = vor.u32 %v2056_v28, %v1703_v32  ;;  %v1691_v38 = vld [vmem:[#allocation7 + $0x144] sm:$0xf0]  ;;  %v2024_v41 = vld [vmem:[#allocation7 + $0x50] sm:$0xf0]  ;;  %v1598_v43 = vor.u32 %v2029_v34, %v1595_v36  ;;  %v2026_v46 = vld [vmem:[#allocation7 + $0x64] sm:$0xf] }
  0x24   :  { %v1569_v40 = vld [vmem:[#allocation7 + $0x48] sm:$0xf]  ;;  %v2048_v44 = vld [vmem:[#allocation7 + $0x110] sm:$0xf0]  ;;  %v1694_v45 = vor.u32 %v2053_v37, %v1691_v38  ;;  %v1583_v47 = vld [vmem:[#allocation7 + $0x6c] sm:$0xf0] }
  0x25   :  { %749 = vmatpush.bf16.msra.mxu0 %v1594_v21  ;;  %v1665_v42 = vld [vmem:[#allocation7 + $0x108] sm:$0xf]  ;;  %774 = vmatpush.bf16.msra.mxu2 %v1610_v31  ;;  %v2050_v48 = vld [vmem:[#allocation7 + $0x124] sm:$0xf]  ;;  %v1679_v49 = vld [vmem:[#allocation7 + $0x12c] sm:$0xf0]  ;;  %v1570_v50 = vor.u32 %v2024_v41, %v1569_v40  ;;  %v1586_v55 = vor.u32 %v2026_v46, %v1583_v47 }
  0x26   :  { %762 = vmatpush.bf16.msra.mxu1 %v1690_v25  ;;  %787 = vmatpush.bf16.msra.mxu3 %v1706_v33  ;;  %v1666_v51 = vor.u32 %v2048_v44, %v1665_v42  ;;  %v1557_v52 = vld [vmem:[#allocation7 + $0x30] sm:$0xf]  ;;  %v2021_v53 = vld [vmem:[#allocation7 + $0x38] sm:$0xf0]  ;;  %v1682_v57 = vor.u32 %v2050_v48, %v1679_v49  ;;  %v2023_v58 = vld [vmem:[#allocation7 + $0x4c] sm:$0xf] }
  0x27   :  { %v1653_v54 = vld [vmem:[#allocation7 + $0xf0] sm:$0xf]  ;;  %v2045_v56 = vld [vmem:[#allocation7 + $0xf8] sm:$0xf0]  ;;  %v1571_v59 = vld [vmem:[#allocation7 + $0x54] sm:$0xf0]  ;;  %v1558_v62 = vor.u32 %v2021_v53, %v1557_v52 }
  0x28   :  { %v2047_v60 = vld [vmem:[#allocation7 + $0x10c] sm:$0xf]  ;;  %v1667_v61 = vld [vmem:[#allocation7 + $0x114] sm:$0xf0]  ;;  %v1654_v63 = vor.u32 %v2045_v56, %v1653_v54  ;;  %v2018_v1 = vld [vmem:[#allocation7 + $0x20] sm:$0xf0]  ;;  %v1574_v3 = vor.u32 %v2023_v58, %v1571_v59 }
  0x29   :  { %750 = vmatpush.bf16.msra.mxu0 %v1582_v35  ;;  %775 = vmatpush.bf16.msra.mxu2 %v1598_v43  ;;  %v1545_v0 = vld [vmem:[#allocation7 + $0x18] sm:$0xf]  ;;  %v2042_v4 = vld [vmem:[#allocation7 + $0xe0] sm:$0xf0]  ;;  %v1670_v5 = vor.u32 %v2047_v60, %v1667_v61  ;;  %v2020_v6 = vld [vmem:[#allocation7 + $0x34] sm:$0xf] }
  0x2a   :  { %763 = vmatpush.bf16.msra.mxu1 %v1678_v39  ;;  %788 = vmatpush.bf16.msra.mxu3 %v1694_v45  ;;  %v1641_v2 = vld [vmem:[#allocation7 + $0xd8] sm:$0xf]  ;;  %v1559_v7 = vld [vmem:[#allocation7 + $0x3c] sm:$0xf0]  ;;  %v2044_v8 = vld [vmem:[#allocation7 + $0xf4] sm:$0xf]  ;;  %v1546_v10 = vor.u32 %v2018_v1, %v1545_v0 }
  0x2b   :  { %v1655_v9 = vld [vmem:[#allocation7 + $0xfc] sm:$0xf0]  ;;  %v1642_v12 = vor.u32 %v2042_v4, %v1641_v2  ;;  %v2015_v13 = vld [vmem:[#allocation7 + $0x8] sm:$0xf0]  ;;  %v1562_v16 = vor.u32 %v2020_v6, %v1559_v7  ;;  %v1625_v17 = vld [vmem:[#allocation7 + $0xb0] sm:$0xf] }
  0x2c   :  { %v1533_v11 = vld [vmem:[#allocation7] sm:$0xf]  ;;  %v2039_v15 = vld [vmem:[#allocation7 + $0xc8] sm:$0xf0]  ;;  %v2037_v18 = vld [vmem:[#allocation7 + $0xb8] sm:$0xf0]  ;;  %v1658_v20 = vor.u32 %v2044_v8, %v1655_v9 }
  0x2d   :  { %751 = vmatpush.bf16.msra.mxu0 %v1570_v50  ;;  %776 = vmatpush.bf16.msra.mxu2 %v1586_v55  ;;  %v1629_v14 = vld [vmem:[#allocation7 + $0xc0] sm:$0xf]  ;;  %v1721_v19 = vld [vmem:[#allocation7 + $0x170] sm:$0xf]  ;;  %v2061_v21 = vld [vmem:[#allocation7 + $0x178] sm:$0xf0]  ;;  %v1534_v24 = vor.u32 %v2015_v13, %v1533_v11  ;;  %v1626_v28 = vor.u32 %v2037_v18, %v1625_v17 }
  0x2e   :  { %764 = vmatpush.bf16.msra.mxu1 %v1666_v51  ;;  %789 = vmatpush.bf16.msra.mxu3 %v1682_v57  ;;  %v2017_v22 = vld [vmem:[#allocation7 + $0x1c] sm:$0xf]  ;;  %v1547_v23 = vld [vmem:[#allocation7 + $0x24] sm:$0xf0]  ;;  %s2368_s3 = sld [smem:[#allocation2]]  ;;  %v1630_v27 = vor.u32 %v2039_v15, %v1629_v14  ;;  %v1722_v29 = vor.u32 %v2061_v21, %v1721_v19  ;;  %vm106_vm0 = vcmask 1040384  }
  0x2f   :  { %v2041_v25 = vld [vmem:[#allocation7 + $0xdc] sm:$0xf]  ;;  %v1643_v26 = vld [vmem:[#allocation7 + $0xe4] sm:$0xf0]  ;;  %s2370_s4 = sld [smem:[#allocation2 + $0x1]]  ;;  %v1550_v33 = vor.u32 %v2017_v22, %v1547_v23  ;;  %s1511_s25 = sshll.u32 %s2472_s6, 4  ;;  %s1512_s25 = int_to_ptr.hbm [resolvable:$true] %s1511_s25 }
  0x30   :  { %v1613_v30 = vld [vmem:[#allocation7 + $0x98] sm:$0xf]  ;;  %v2034_v31 = vld [vmem:[#allocation7 + $0xa0] sm:$0xf0]  ;;  %v1646_v35 = vor.u32 %v2041_v25, %v1643_v26  ;;  %v1535_v37 = vld [vmem:[#allocation7 + $0xc] sm:$0xf0] }
  0x31   :  { %752 = vmatpush.bf16.msra.mxu0 %v1558_v62  ;;  %777 = vmatpush.bf16.msra.mxu2 %v1574_v3  ;;  %v1709_v32 = vld [vmem:[#allocation7 + $0x158] sm:$0xf]  ;;  %v2058_v34 = vld [vmem:[#allocation7 + $0x160] sm:$0xf0]  ;;  %v1631_v39 = vld [vmem:[#allocation7 + $0xcc] sm:$0xf0]  ;;  %v1614_v40 = vor.u32 %v2034_v31, %v1613_v30 }
  0x32   :  { %765 = vmatpush.bf16.msra.mxu1 %v1654_v63  ;;  %790 = vmatpush.bf16.msra.mxu3 %v1670_v5  ;;  %v2014_v36 = vld [vmem:[#allocation7 + $0x4] sm:$0xf]  ;;  %v96_v41 = vld [vmem:[#allocation6] sm:$0x1]  ;;  %v1710_v42 = vor.u32 %v2058_v34, %v1709_v32  ;;  %v1601_v43 = vld [vmem:[#allocation7 + $0x80] sm:$0xf] }
  0x33   :  { %v2038_v38 = vld [vmem:[#allocation7 + $0xc4] sm:$0xf]  ;;  %v2031_v44 = vld [vmem:[#allocation7 + $0x88] sm:$0xf0]  ;;  %v1538_v45 = vor.u32 %v2014_v36, %v1535_v37  ;;  %v1697_v47 = vld [vmem:[#allocation7 + $0x140] sm:$0xf] }
  0x34   :  { %v98_v46 = vstv %s2368_s3  ;;  %v2055_v48 = vld [vmem:[#allocation7 + $0x148] sm:$0xf0]  ;;  %v1634_v49 = vor.u32 %v2038_v38, %v1631_v39  ;;  %v1602_v53 = vor.u32 %v2031_v44, %v1601_v43  ;;  %v1589_v55 = vld [vmem:[#allocation7 + $0x68] sm:$0xf]  ;;  %v2028_v56 = vld [vmem:[#allocation7 + $0x70] sm:$0xf0] }
  0x35   :  { %753 = vmatpush.bf16.msra.mxu0 %v1546_v10  ;;  %778 = vmatpush.bf16.msra.mxu2 %v1562_v16  ;;  %v101_v50 = vstv %s2370_s4  ;;  %v99_v51 = vmul.f32 %v98_v46, %v96_v41  ;;  %v1698_v54 = vor.u32 %v2055_v48, %v1697_v47  ;;  %v1685_v58 = vld [vmem:[#allocation7 + $0x128] sm:$0xf]  ;;  %v2052_v59 = vld [vmem:[#allocation7 + $0x130] sm:$0xf0]  ;;  %v1590_v61 = vor.u32 %v2028_v56, %v1589_v55 }
  0x36   :  { %766 = vmatpush.bf16.msra.mxu1 %v1642_v12  ;;  %791 = vmatpush.bf16.msra.mxu3 %v1658_v20  ;;  %v102_v52 = vmul.f32 %v101_v50, %v96_v41  ;;  %v1686_v63 = vor.u32 %v2052_v59, %v1685_v58  ;;  %v2310_v10 = vmov 683565275   ;;  %v2311_v12 = vmov 2475754826  }
  0x37   :  { %v2312_v14 = vmov 2131351028   ;;  %v2313_v16 = vmov 2102212464   ;;  %v2314_v18 = vmov 920167782  }
  0x38   :  { %v104_v57 = vperm.slane %v102_v52, 0 }
  0x39   :  { %754 = vmatpush.bf16.msra.mxu0 %v1534_v24  ;;  %779 = vmatpush.bf16.msra.mxu2 %v1550_v33  ;;  %v2315_v24 = vmov 1326507024  }
  0x3a   :  { %767 = vmatpush.bf16.msra.mxu1 %v1630_v27  ;;  %792 = vmatpush.bf16.msra.mxu3 %v1646_v35  ;;  %v2374_v60 = vsel %vm106_vm0, %v99_v51, %v104_v57 }
  0x3b   :  { %v111_v62 = vand.u32 2139095040, %v2374_v60  ;;  %v108_v1 = vand.u32 2147483647, %v2374_v60  ;;  %vm110_vm13 = vcmp.lt.s32.totalorder %v2374_v60, 0 }
  0x3d   :  { %799 = vmatpush.bf16.msrb.mxu0 %v1626_v28  ;;  %780 = vmatpush.bf16.msra.mxu2 %v1538_v45  ;;  %v112_v0 = vshrl.u32 %v111_v62, 23  ;;  %v115_v4 = vand.u32 8388607, %v108_v1  ;;  %vm2418_vm14 = vcmp.le.f32.partialorder %v108_v1, 0.7853982 }
  0x3e   :  { %812 = vmatpush.bf16.msrb.mxu1 %v1722_v29  ;;  %793 = vmatpush.bf16.msra.mxu3 %v1634_v49 }
  0x3f   :  { %v1525_v2 = vadd.s32 4294967169, %v112_v0  ;;  %v116_v7 = vor.u32 8388608, %v115_v4 }
  0x41   :  { %800 = vmatpush.bf16.msrb.mxu0 %v1614_v40  ;;  %v118_v3 = vadd.s32 1, %v1525_v2  ;;  %v2383_v26 = vshll.u32 %v116_v7, 8 }
  0x42   :  { %813 = vmatpush.bf16.msrb.mxu1 %v1710_v42 }
  0x43   :  { %vm119_vm1 = vcmp.gt.s32.totalorder %v118_v3, 0  ;;  %v157_v38 = vand.u32 65535, %v2383_v26  ;;  %v158_v39 = vshrl.u32 %v2383_v26, 16 }
  0x44   :  { %v120_v5 = vsel %vm119_vm1, %v118_v3, 0 }
  0x45   :  { %801 = vmatpush.bf16.msrb.mxu0 %v1602_v53  ;;  %v122_v6 = vand.u32 31, %v120_v5  ;;  %v2380_v8 = vshrl.u32 %v120_v5, 5 }
  0x46   :  { %814 = vmatpush.bf16.msrb.mxu1 %v1698_v54 }
  0x47   :  { %v123_v9 = vsub.s32 32, %v122_v6  ;;  %v125_v11 = vshll.u32 %v2310_v10, %v122_v6  ;;  %v128_v13 = vshll.u32 %v2311_v12, %v122_v6  ;;  %v131_v15 = vshll.u32 %v2312_v14, %v122_v6 }
  0x48   :  { %v134_v17 = vshll.u32 %v2313_v16, %v122_v6  ;;  %v137_v19 = vshll.u32 %v2314_v18, %v122_v6  ;;  %vm140_vm2 = vcmp.lt.s32.totalorder %v2380_v8, 1  ;;  %vm143_vm3 = vcmp.lt.s32.totalorder %v2380_v8, 4 }
  0x49   :  { %802 = vmatpush.bf16.msrb.mxu0 %v1590_v61  ;;  %v126_v20 = vshrl.u32 %v2311_v12, %v123_v9  ;;  %v129_v21 = vshrl.u32 %v2312_v14, %v123_v9  ;;  %v132_v22 = vshrl.u32 %v2313_v16, %v123_v9  ;;  %v135_v23 = vshrl.u32 %v2314_v18, %v123_v9 }
  0x4a   :  { %815 = vmatpush.bf16.msrb.mxu1 %v1686_v63  ;;  %v138_v25 = vshrl.u32 %v2315_v24, %v123_v9  ;;  %vm142_vm4 = vcmp.lt.s32.totalorder %v2380_v8, 3  ;;  %vm141_vm5 = vcmp.lt.s32.totalorder %v2380_v8, 2  ;;  %v124_v46 = vshrl.u32 %v2310_v10, %v123_v9 }
  0x4b   :  { %v127_v27 = vor.u32 %v126_v20, %v125_v11  ;;  %v130_v28 = vor.u32 %v129_v21, %v128_v13  ;;  %v133_v29 = vor.u32 %v132_v22, %v131_v15  ;;  %v136_v30 = vor.u32 %v135_v23, %v134_v17 }
  0x4c   :  { %v139_v31 = vor.u32 %v138_v25, %v137_v19  ;;  %v2316_v63 = vmov 0  }
  0x4d   :  { %v148_v32 = vsel %vm140_vm2, %v127_v27, %v130_v28  ;;  %v152_v33 = vsel %vm140_vm2, %v130_v28, %v133_v29  ;;  %v149_v34 = vsel %vm143_vm3, %v136_v30, 920167782  ;;  %v144_v59 = vsel %vm140_vm2, %v124_v46, %v127_v27 }
  0x4e   :  { %v153_v35 = vsel %vm143_vm3, %v139_v31, 1326507024  ;;  %v150_v36 = vsel %vm142_vm4, %v133_v29, %v149_v34  ;;  %v145_v62 = vsel %vm143_vm3, %v133_v29, 2102212464 }
  0x4f   :  { %v154_v37 = vsel %vm142_vm4, %v136_v30, %v153_v35  ;;  %v151_v40 = vsel %vm141_vm5, %v148_v32, %v150_v36  ;;  %v146_v10 = vsel %vm142_vm4, %v130_v28, %v145_v62  ;;  %v1649_v62 = vld [vmem:[#allocation7 + $0xe0] sm:$0xf] }
  0x50   :  { %v155_v41 = vsel %vm141_vm5, %v152_v33, %v154_v37  ;;  %v181_v44 = vand.u32 65535, %v151_v40  ;;  %v182_v45 = vshrl.u32 %v151_v40, 16  ;;  %v147_v18 = vsel %vm141_vm5, %v144_v59, %v146_v10  ;;  %v2019_v59 = vld [vmem:[#allocation7 + $0x28] sm:$0xf0] }
  0x51   :  { %v159_v42 = vand.u32 65535, %v155_v41  ;;  %v160_v43 = vshrl.u32 %v155_v41, 16  ;;  %v201_v22 = vmul.u32 %v2383_v26, %v147_v18  ;;  %vm251_vm5 = vweird.f32 %v2374_v60 }
  0x52   :  { %v183_v50 = vmul.u32 %v181_v44, %v157_v38  ;;  %v184_v51 = vmul.u32 %v182_v45, %v157_v38  ;;  %v185_v52 = vmul.u32 %v181_v44, %v158_v39  ;;  %v186_v56 = vmul.u32 %v182_v45, %v158_v39  ;;  %v1577_v44 = vld [vmem:[#allocation7 + $0x50] sm:$0xf]  ;;  %v2025_v45 = vld [vmem:[#allocation7 + $0x58] sm:$0xf0] }
  0x53   :  { %v161_v47 = vmul.u32 %v159_v42, %v157_v38  ;;  %v162_v48 = vmul.u32 %v160_v43, %v157_v38  ;;  %v163_v49 = vmul.u32 %v159_v42, %v158_v39  ;;  %v164_v53 = vmul.u32 %v160_v43, %v158_v39 }
  0x54   :  { %v187_v57 = vshll.u32 %v184_v51, 16  ;;  %v189_v58 = vshll.u32 %v185_v52, 16  ;;  %v188_v7 = vshrl.u32 %v184_v51, 16  ;;  %v190_v14 = vshrl.u32 %v185_v52, 16  ;;  %v1565_v51 = vld [vmem:[#allocation7 + $0x38] sm:$0xf] }
  0x55   :  { %v165_v54 = vshll.u32 %v162_v48, 16  ;;  %v167_v55 = vshll.u32 %v163_v49, 16  ;;  %v166_v3 = vshrl.u32 %v162_v48, 16  ;;  %v168_v11 = vshrl.u32 %v163_v49, 16  ;;  %v2049_v48 = vld [vmem:[#allocation7 + $0x118] sm:$0xf0] }
  0x56   :  { %vm191_vm7 = vc.u32 %v183_v50, %v187_v57  ;;  %v193_v2 = vadd.s32 %v187_v57, %v183_v50  ;;  %v1578_v46 = vor.u32 %v2025_v45, %v1577_v44  ;;  %v2022_v52 = vld [vmem:[#allocation7 + $0x40] sm:$0xf0]  ;;  %v2075_v45 = vld [vmem:[#allocation10 + $0x68] sm:$0xf0] }
  0x57   :  { %vm169_vm6 = vc.u32 %v161_v47, %v165_v54  ;;  %v171_v61 = vadd.s32 %v165_v54, %v161_v47  ;;  %v192_v5 = vsel %vm191_vm7, 1, %v2316_v63  ;;  %v1673_v47 = vld [vmem:[#allocation7 + $0x110] sm:$0xf]  ;;  %v1661_v54 = vld [vmem:[#allocation7 + $0xf8] sm:$0xf] }
  0x58   :  { %v170_v0 = vsel %vm169_vm6, 1, %v2316_v63  ;;  %v194_v9 = vadd.s32 %v192_v5, %v186_v56  ;;  %vm195_vm9 = vc.u32 %v193_v2, %v189_v58  ;;  %v197_v17 = vadd.s32 %v193_v2, %v189_v58  ;;  %803 = vmatpush.bf16.msrb.mxu0 %v1578_v46  ;;  %v1553_v58 = vld [vmem:[#allocation7 + $0x20] sm:$0xf]  ;;  %v1776_v44 = vld [vmem:[#allocation10 + $0x60] sm:$0xf] }
  0x59   :  { %v172_v4 = vadd.s32 %v170_v0, %v164_v53  ;;  %vm173_vm8 = vc.u32 %v171_v61, %v167_v55  ;;  %v196_v13 = vsel %vm195_vm9, 1, %v2316_v63  ;;  %v1674_v50 = vor.u32 %v2049_v48, %v1673_v47  ;;  %v2046_v55 = vld [vmem:[#allocation7 + $0x100] sm:$0xf0] }
  0x5a   :  { %v174_v6 = vsel %vm173_vm8, 1, %v2316_v63  ;;  %v198_v15 = vadd.s32 %v196_v13, %v194_v9  ;;  %v1566_v53 = vor.u32 %v2022_v52, %v1565_v51  ;;  %v1662_v57 = vor.u32 %v2046_v55, %v1661_v54  ;;  %v2043_v63 = vld [vmem:[#allocation7 + $0xe8] sm:$0xf0]  ;;  %v2083_v52 = vld [vmem:[#allocation10 + $0xac] sm:$0xf] }
  0x5b   :  { %v176_v12 = vadd.s32 %v174_v6, %v172_v4  ;;  %816 = vmatpush.bf16.msrb.mxu1 %v1674_v50  ;;  %v1650_v5 = vor.u32 %v2043_v63, %v1649_v62  ;;  %v1541_v6 = vld [vmem:[#allocation7 + $0x8] sm:$0xf]  ;;  %v1777_v51 = vor.u32 %v2075_v45, %v1776_v44  ;;  %v1860_v45 = vld [vmem:[#allocation10 + $0x108] sm:$0xf] }
  0x5c   :  { %v199_v19 = vadd.s32 %v198_v15, %v188_v7  ;;  %804 = vmatpush.bf16.msrb.mxu0 %v1566_v53  ;;  %v2016_v7 = vld [vmem:[#allocation7 + $0x10] sm:$0xf0]  ;;  %v1814_v53 = vld [vmem:[#allocation10 + $0xb4] sm:$0xf0] }
  0x5d   :  { %v177_v16 = vadd.s32 %v176_v12, %v166_v3  ;;  %v1554_v3 = vor.u32 %v2019_v59, %v1553_v58  ;;  %v2040_v12 = vld [vmem:[#allocation7 + $0xd0] sm:$0xf0]  ;;  %v1542_v1 = vor.u32 %v2016_v7, %v1541_v6  ;;  %v1817_v63 = vor.u32 %v2083_v52, %v1814_v53  ;;  %v2077_v7 = vld [vmem:[#allocation10 + $0x7c] sm:$0xf]  ;;  %v1742_v52 = vld [vmem:[#allocation10 + $0x24] sm:$0xf0] }
  0x5e   :  { %v200_v21 = vadd.s32 %v199_v19, %v190_v14  ;;  %v2101_v53 = vld [vmem:[#allocation10 + $0x13c] sm:$0xf] }
  0x5f   :  { %v178_v20 = vadd.s32 %v177_v16, %v168_v11  ;;  %817 = vmatpush.bf16.msrb.mxu1 %v1662_v57  ;;  %v1637_v11 = vld [vmem:[#allocation7 + $0xc8] sm:$0xf]  ;;  %v2072_v57 = vld [vmem:[#allocation10 + $0x50] sm:$0xf0] }
  0x60   :  { %v204_v23 = vadd.s32 1, %v200_v21  ;;  %805 = vmatpush.bf16.msrb.mxu0 %v1554_v3 }
  0x61   :  { %vm203_vm10 = vc.u32 %v178_v20, %v197_v17  ;;  %v202_v8 = vadd.s32 %v197_v17, %v178_v20  ;;  %v1638_v17 = vor.u32 %v2040_v12, %v1637_v11  ;;  %v1896_v11 = vld [vmem:[#allocation10 + $0x150] sm:$0xf]  ;;  %v2105_v12 = vld [vmem:[#allocation10 + $0x158] sm:$0xf0] }
  0x62   :  { %v205_v24 = vsel %vm203_vm10, %v204_v23, %v200_v21  ;;  %v1812_v23 = vld [vmem:[#allocation10 + $0xa8] sm:$0xf] }
  0x63   :  { %v206_v25 = vadd.s32 %v205_v24, %v201_v22  ;;  %818 = vmatpush.bf16.msrb.mxu1 %v1650_v5  ;;  %v2084_v24 = vld [vmem:[#allocation10 + $0xb0] sm:$0xf0]  ;;  %v2069_v5 = vld [vmem:[#allocation10 + $0x38] sm:$0xf0] }
  0x64   :  { %806 = vmatpush.bf16.msrb.mxu0 %v1542_v1  ;;  %v1740_v1 = vld [vmem:[#allocation10 + $0x18] sm:$0xf] }
  0x65   :  { %v207_v27 = vadd.s32 536870912, %v206_v25 }
  0x67   :  { %v208_v28 = vshrl.u32 %v207_v27, 30  ;;  %819 = vmatpush.bf16.msrb.mxu1 %v1638_v17  ;;  %v1778_v17 = vld [vmem:[#allocation10 + $0x6c] sm:$0xf0] }
  0x69   :  { %v209_v29 = vshll.u32 %v208_v28, 30  ;;  %v232_v61 = vsub.s32 4, %v208_v28 }
  0x6b   :  { %v210_v30 = vsub.s32 %v206_v25, %v209_v29  ;;  %v233_v9 = vsel %vm110_vm13, %v232_v61, %v208_v28  ;;  %v1800_v25 = vld [vmem:[#allocation10 + $0x90] sm:$0xf]  ;;  %v1813_v29 = vor.u32 %v2084_v24, %v1812_v23  ;;  %v2063_v23 = vld [vmem:[#allocation10 + $0x8] sm:$0xf0] }
  0x6c   :  { %v235_v14 = vsel %vm2418_vm14, 0, %v233_v9  ;;  %v1790_v9 = vld [vmem:[#allocation10 + $0x84] sm:$0xf0] }
  0x6d   :  { %vm211_vm11 = vcmp.lt.s32.totalorder %v210_v30, 0  ;;  %v212_v31 = vsub.s32 0, %v210_v30  ;;  %v406_v20 = vadd.s32 3, %v235_v14  ;;  %1376 = vmatpush.bf16.msrb.mxu2 %v1813_v29 }
  0x6f   :  { %v213_v32 = vsel %vm211_vm11, %v212_v31, %v210_v30  ;;  %v252_v31 = vand.u32 3, %v235_v14  ;;  %v2066_v14 = vld [vmem:[#allocation10 + $0x20] sm:$0xf0] }
  0x70   :  { %v214_v33 = vclz %v213_v32  ;;  %v407_v32 = vand.u32 3, %v406_v20  ;;  %v2102_v20 = vld [vmem:[#allocation10 + $0x140] sm:$0xf0] }
  0x71   :  { %vm253_vm15 = vcmp.lt.s32.totalorder %v252_v31, 2  ;;  %vm257_vm0 = vcmp.eq.s32.totalorder %v252_v31, 2  ;;  %vm254_vm2 = vcmp.eq.s32.totalorder %v252_v31, 0  ;;  %v2107_v31 = vld [vmem:[#allocation10 + $0x16c] sm:$0xf] }
  0x72   :  { %v1526_v34 = vadd.s32 4294967294, %v214_v33  ;;  %vm412_vm1 = vcmp.eq.s32.totalorder %v407_v32, 2  ;;  %vm409_vm3 = vcmp.eq.s32.totalorder %v407_v32, 0  ;;  %vm408_vm4 = vcmp.lt.s32.totalorder %v407_v32, 2  ;;  %v1910_v32 = vld [vmem:[#allocation10 + $0x174] sm:$0xf0] }
  0x74   :  { %vm1527_vm12 = vcmp.lt.s32.totalorder %v1526_v34, 0 }
  0x75   :  { %v217_v35 = vsel %vm1527_vm12, 0, %v1526_v34 }
  0x76   :  { %v218_v36 = vsub.s32 32, %v217_v35  ;;  %v219_v37 = vshll.u32 %v210_v30, %v217_v35  ;;  %v222_v38 = vsub.s32 4294967266, %v217_v35  ;;  %v2081_v30 = vld [vmem:[#allocation10 + $0x98] sm:$0xf0]  ;;  %v1788_v35 = vld [vmem:[#allocation10 + $0x78] sm:$0xf] }
  0x78   :  { %v220_v26 = vshrl.u32 %v202_v8, %v218_v36  ;;  %v223_v39 = vadd.s32 127, %v222_v38  ;;  %v1801_v8 = vor.u32 %v2081_v30, %v1800_v25  ;;  %v2078_v36 = vld [vmem:[#allocation10 + $0x80] sm:$0xf0]  ;;  %v2004_v25 = vld [vmem:[#allocation10 + $0x228] sm:$0xf] }
  0x79   :  { %v1766_v30 = vld [vmem:[#allocation10 + $0x54] sm:$0xf0] }
  0x7a   :  { %v221_v40 = vor.u32 %v220_v26, %v219_v37  ;;  %v224_v41 = vshll.u32 %v223_v39, 23  ;;  %v1908_v26 = vld [vmem:[#allocation10 + $0x168] sm:$0xf]  ;;  %v2108_v39 = vld [vmem:[#allocation10 + $0x170] sm:$0xf0]  ;;  %1377 = vmatpush.bf16.msrb.mxu2 %v1801_v8 }
  0x7b   :  { %v1872_v8 = vld [vmem:[#allocation10 + $0x120] sm:$0xf] }
  0x7c   :  { %v225_v42 = vor.u32 4788187, %v224_v41  ;;  %v228_v43 = vcvt.s32.f32 %v221_v40 }
  0x7e   :  { %v226_v49 = vand.u32 2147483647, %v225_v42  ;;  %v1789_v42 = vor.u32 %v2078_v36, %v1788_v35  ;;  %v2099_v35 = vld [vmem:[#allocation10 + $0x128] sm:$0xf0] }
  0x7f   :  { %v1873_v36 = vor.u32 %v2099_v35, %v1872_v8  ;;  %v2103_v8 = vld [vmem:[#allocation10 + $0x148] sm:$0xf0] }
  0x80   :  { %v229_v56 = vmul.f32 %v228_v43, %v226_v49  ;;  %v1909_v43 = vor.u32 %v2108_v39, %v1908_v26  ;;  %1378 = vmatpush.bf16.msrb.mxu2 %v1789_v42  ;;  %v2068_v26 = vld [vmem:[#allocation10 + $0x34] sm:$0xf]  ;;  %v1898_v42 = vld [vmem:[#allocation10 + $0x15c] sm:$0xf0] }
  0x82   :  { %v230_v2 = vxor.u32 2147483648, %v229_v56  ;;  %1389 = vmatpush.bf16.msrb.mxu3 %v1909_v43 }
  0x84   :  { %v231_v4 = vsel %vm110_vm13, %v230_v2, %v229_v56  ;;  %v1764_v56 = vld [vmem:[#allocation10 + $0x48] sm:$0xf]  ;;  %1379 = vmatpush.bf16.msrb.mxu2 %v1777_v51  ;;  %v2080_v2 = vld [vmem:[#allocation10 + $0x94] sm:$0xf] }
  0x85   :  { %v234_v10 = vsel %vm2418_vm14, %v2374_v60, %v231_v4  ;;  %v1765_v0 = vor.u32 %v2072_v57, %v1764_v56  ;;  %v1802_v60 = vld [vmem:[#allocation10 + $0x9c] sm:$0xf0]  ;;  %v1752_v4 = vld [vmem:[#allocation10 + $0x30] sm:$0xf]  ;;  %v2093_v57 = vld [vmem:[#allocation10 + $0xf8] sm:$0xf0] }
  0x86   :  { %v236_v13 = vmul.f32 %v234_v10, %v234_v10  ;;  %v1805_v3 = vor.u32 %v2080_v2, %v1802_v60  ;;  %v1753_v6 = vor.u32 %v2069_v5, %v1752_v4  ;;  %v1848_v56 = vld [vmem:[#allocation10 + $0xf0] sm:$0xf]  ;;  %v2098_v60 = vld [vmem:[#allocation10 + $0x124] sm:$0xf] }
  0x87   :  { %v1730_v2 = vld [vmem:[#allocation10 + $0xc] sm:$0xf0] }
  0x88   :  { %v237_v15 = vmul.f32 -0.001358992, %v236_v13  ;;  %v244_v16 = vmul.f32 -0.00019511016, %v236_v13  ;;  %1380 = vmatpush.bf16.msrb.mxu2 %v1765_v0 }
  0x8a   :  { %v238_v18 = vadd.f32 0.041655596, %v237_v15  ;;  %v245_v19 = vadd.f32 0.008332121, %v244_v16  ;;  %v1741_v15 = vor.u32 %v2066_v14, %v1740_v1  ;;  %v2074_v16 = vld [vmem:[#allocation10 + $0x64] sm:$0xf] }
  0x8b   :  { %v2120_v1 = vld [vmem:[#allocation10 + $0x1d0] sm:$0xf0]  ;;  %v2095_v14 = vld [vmem:[#allocation10 + $0x10c] sm:$0xf] }
  0x8c   :  { %v239_v21 = vmul.f32 %v238_v18, %v236_v13  ;;  %v246_v22 = vmul.f32 %v245_v19, %v236_v13  ;;  %1381 = vmatpush.bf16.msrb.mxu2 %v1753_v6  ;;  %v1781_v18 = vor.u32 %v2074_v16, %v1778_v17  ;;  %v1884_v19 = vld [vmem:[#allocation10 + $0x138] sm:$0xf]  ;;  %v1916_v6 = vld [vmem:[#allocation10 + $0x170] sm:$0xf] }
  0x8d   :  { %v1862_v16 = vld [vmem:[#allocation10 + $0x114] sm:$0xf0] }
  0x8e   :  { %v240_v27 = vadd.f32 -0.4999988, %v239_v21  ;;  %v247_v28 = vadd.f32 -0.16666654, %v246_v22  ;;  %v1885_v21 = vor.u32 %v2102_v20, %v1884_v19  ;;  %v1728_v22 = vld [vmem:[#allocation10] sm:$0xf]  ;;  %v1865_v19 = vor.u32 %v2095_v14, %v1862_v16 }
  0x8f   :  { %v1729_v24 = vor.u32 %v2063_v23, %v1728_v22  ;;  %v1904_v17 = vld [vmem:[#allocation10 + $0x158] sm:$0xf]  ;;  %v2087_v22 = vld [vmem:[#allocation10 + $0xc8] sm:$0xf0]  ;;  %v2429_v23 = vld [vmem:[#allocation9] sm:$0x7] }
  0x90   :  { %v241_v33 = vmul.f32 %v240_v27, %v236_v13  ;;  %v248_v34 = vmul.f32 %v247_v28, %v236_v13  ;;  %v1897_v13 = vor.u32 %v2105_v12, %v1896_v11  ;;  %1382 = vmatpush.bf16.msrb.mxu2 %v1741_v15  ;;  %v2132_v27 = vld [vmem:[#allocation10 + $0x230] sm:$0xf0]  ;;  %v2071_v28 = vld [vmem:[#allocation10 + $0x4c] sm:$0xf]  ;;  %v2090_v11 = vld [vmem:[#allocation10 + $0xe0] sm:$0xf0] }
  0x91   :  { %v2005_v29 = vor.u32 %v2132_v27, %v2004_v25  ;;  %v2131_v25 = vld [vmem:[#allocation10 + $0x22c] sm:$0xf]  ;;  %v2006_v27 = vld [vmem:[#allocation10 + $0x234] sm:$0xf0]  ;;  %v485_v35 = vperm.slane %v2429_v23, 0 }
  0x92   :  { %v242_v37 = vadd.f32 1.0, %v241_v33  ;;  %v249_v38 = vadd.f32 1.0, %v248_v34  ;;  %1390 = vmatpush.bf16.msrb.mxu3 %v1897_v13  ;;  %v1769_v33 = vor.u32 %v2071_v28, %v1766_v30  ;;  %v1913_v34 = vor.u32 %v2107_v31, %v1910_v32  ;;  %v1956_v13 = vld [vmem:[#allocation10 + $0x1c8] sm:$0xf]  ;;  %v2117_v30 = vld [vmem:[#allocation10 + $0x1b8] sm:$0xf0] }
  0x93   :  { %v1957_v15 = vor.u32 %v2120_v1, %v1956_v13  ;;  %v2009_v28 = vor.u32 %v2131_v25, %v2006_v27  ;;  %v2092_v31 = vld [vmem:[#allocation10 + $0xf4] sm:$0xf]  ;;  %v2082_v16 = vld [vmem:[#allocation10 + $0xa0] sm:$0xf0] }
  0x94   :  { %v250_v40 = vmul.f32 %v249_v38, %v234_v10  ;;  %v258_v41 = vxor.u32 2147483648, %v242_v37  ;;  %v1793_v10 = vor.u32 %v2077_v7, %v1790_v9  ;;  %1383 = vmatpush.bf16.msrb.mxu2 %v1729_v24  ;;  %v2129_v38 = vld [vmem:[#allocation10 + $0x218] sm:$0xf0]  ;;  %v1836_v9 = vld [vmem:[#allocation10 + $0xd8] sm:$0xf] }
  0x95   :  { %v2109_v7 = vld [vmem:[#allocation10 + $0x178] sm:$0xf0]  ;;  %v1837_v12 = vor.u32 %v2090_v11, %v1836_v9  ;;  %v1970_v11 = vld [vmem:[#allocation10 + $0x1ec] sm:$0xf0] }
  0x96   :  { %v255_v46 = vxor.u32 2147483648, %v250_v40  ;;  %v259_v47 = vsel %vm257_vm0, %v258_v41, %v250_v40  ;;  %v414_v48 = vsel %vm412_vm1, %v258_v41, %v250_v40  ;;  %1391 = vmatpush.bf16.msrb.mxu3 %v1885_v21  ;;  %v1754_v40 = vld [vmem:[#allocation10 + $0x3c] sm:$0xf0]  ;;  %v2104_v41 = vld [vmem:[#allocation10 + $0x154] sm:$0xf] }
  0x97   :  { %v1757_v43 = vor.u32 %v2068_v26, %v1754_v40  ;;  %v1901_v44 = vor.u32 %v2104_v41, %v1898_v42  ;;  %v1824_v21 = vld [vmem:[#allocation10 + $0xc0] sm:$0xf]  ;;  %v1932_v40 = vld [vmem:[#allocation10 + $0x198] sm:$0xf]  ;;  %v2114_v41 = vld [vmem:[#allocation10 + $0x1a0] sm:$0xf0] }
  0x98   :  { %v256_v49 = vsel %vm254_vm2, %v242_v37, %v255_v46  ;;  %v411_v50 = vsel %vm409_vm3, %v242_v37, %v255_v46  ;;  %v1992_v37 = vld [vmem:[#allocation10 + $0x210] sm:$0xf]  ;;  %v2096_v46 = vld [vmem:[#allocation10 + $0x110] sm:$0xf0]  ;;  %v1825_v24 = vor.u32 %v2087_v22, %v1824_v21  ;;  %v1994_v26 = vld [vmem:[#allocation10 + $0x21c] sm:$0xf0] }
  0x99   :  { %v260_v54 = vsel %vm253_vm15, %v256_v49, %v259_v47  ;;  %v415_v55 = vsel %vm408_vm4, %v411_v50, %v414_v48  ;;  %v1993_v39 = vor.u32 %v2129_v38, %v1992_v37  ;;  %v1861_v47 = vor.u32 %v2096_v46, %v1860_v45  ;;  %v1980_v48 = vld [vmem:[#allocation10 + $0x1f8] sm:$0xf]  ;;  %v2126_v49 = vld [vmem:[#allocation10 + $0x200] sm:$0xf0]  ;;  %v2065_v50 = vld [vmem:[#allocation10 + $0x1c] sm:$0xf] }
  0x9a   :  { %v261_v58 = vsel %vm251_vm5, nan, %v260_v54  ;;  %v416_v59 = vsel %vm251_vm5, nan, %v415_v55  ;;  %1392 = vmatpush.bf16.msrb.mxu3 %v1873_v36  ;;  %v1981_v51 = vor.u32 %v2126_v49, %v1980_v48  ;;  %v1745_v54 = vor.u32 %v2065_v50, %v1742_v52  ;;  %v1886_v55 = vld [vmem:[#allocation10 + $0x144] sm:$0xf0]  ;;  %v2128_v38 = vld [vmem:[#allocation10 + $0x214] sm:$0xf] }
  0x9b   :  { %v417_v61 = vpack.c.bf16 %v261_v58, %v261_v58  ;;  %v418_v62 = vpack.c.bf16 %v416_v59, %v416_v59  ;;  %v1889_v58 = vor.u32 %v2101_v53, %v1886_v55  ;;  %v1849_v59 = vor.u32 %v2093_v57, %v1848_v56  ;;  %v2089_v42 = vld [vmem:[#allocation10 + $0xdc] sm:$0xf]  ;;  %v1838_v46 = vld [vmem:[#allocation10 + $0xe4] sm:$0xf0]  ;;  %v2100_v48 = vld [vmem:[#allocation10 + $0x130] sm:$0xf0] }
  0x9c   :  { %v1933_v45 = vor.u32 %v2114_v41, %v1932_v40  ;;  %v1841_v50 = vor.u32 %v2089_v42, %v1838_v46  ;;  %v486_v52 = vperm.slane %v2429_v23, 1  ;;  %v2125_v53 = vld [vmem:[#allocation10 + $0x1fc] sm:$0xf]  ;;  %v1920_v57 = vld [vmem:[#allocation10 + $0x180] sm:$0xf]  ;;  %vm1498_vm2 = vcmask 1041408  }
  0x9d   :  { %755 = vmatmul.bf16.vlgmr.msra.gmra.mxu0 %v417_v61  ;;  %768 = vmatmul.bf16.vlgmr.msra.gmra.mxu1 %v418_v62  ;;  %v2119_v22 = vld [vmem:[#allocation10 + $0x1cc] sm:$0xf]  ;;  %v1784_v41 = vld [vmem:[#allocation10 + $0x68] sm:$0xf]  ;;  %vm1500_vm3 = vcmask 1043456  }
  0x9e   :  { %781 = vmatmul.bf16.vlgmr.msra.gmra.mxu2 %v417_v61  ;;  %794 = vmatmul.bf16.vlgmr.msra.gmra.mxu3 %v418_v62 }
  0x9f   :  { %1415 = vmatpush.bf16.msra.mxu1 %v1817_v63  ;;  %1402 = vmatpush.bf16.msra.mxu0 %v2005_v29  ;;  %v2062_v63 = vld [vmem:[#allocation10 + $0x4] sm:$0xf]  ;;  %v1944_v29 = vld [vmem:[#allocation10 + $0x1b0] sm:$0xf] }
  0xa0   :  { %1428 = vmatpush.bf16.msra.mxu2 %v1913_v34  ;;  %1393 = vmatpush.bf16.msrb.mxu3 %v1861_v47  ;;  %v1733_v4 = vor.u32 %v2062_v63, %v1730_v2  ;;  %v1945_v32 = vor.u32 %v2117_v30, %v1944_v29  ;;  %v1892_v34 = vld [vmem:[#allocation10 + $0x140] sm:$0xf]  ;;  %v1880_v47 = vld [vmem:[#allocation10 + $0x128] sm:$0xf]  ;;  %v1820_v63 = vld [vmem:[#allocation10 + $0xb0] sm:$0xf] }
  0xa1   :  { %v1893_v37 = vor.u32 %v2103_v8, %v1892_v34  ;;  %v2079_v29 = vld [vmem:[#allocation10 + $0x88] sm:$0xf0] }
  0xa2   :  { %v2091_v34 = vld [vmem:[#allocation10 + $0xe8] sm:$0xf0] }
  0xa3   :  { %1416 = vmatpush.bf16.msra.mxu1 %v1805_v3  ;;  %1403 = vmatpush.bf16.msra.mxu0 %v1993_v39  ;;  %v1874_v3 = vld [vmem:[#allocation10 + $0x12c] sm:$0xf0]  ;;  %v1997_v39 = vor.u32 %v2128_v38, %v1994_v26  ;;  %v1946_v26 = vld [vmem:[#allocation10 + $0x1bc] sm:$0xf0] }
  0xa4   :  { %1429 = vmatpush.bf16.msra.mxu2 %v1901_v44  ;;  %1394 = vmatpush.bf16.msrb.mxu3 %v1849_v59  ;;  %v1877_v5 = vor.u32 %v2098_v60, %v1874_v3  ;;  %v2086_v59 = vld [vmem:[#allocation10 + $0xc4] sm:$0xf] }
  0xa7   :  { %1417 = vmatpush.bf16.msra.mxu1 %v1793_v10  ;;  %1404 = vmatpush.bf16.msra.mxu0 %v1981_v51  ;;  %v1917_v10 = vor.u32 %v2109_v7, %v1916_v6  ;;  %v1881_v51 = vor.u32 %v2100_v48, %v1880_v47  ;;  %v2122_v7 = vld [vmem:[#allocation10 + $0x1e4] sm:$0xf] }
  0xa8   :  { %1430 = vmatpush.bf16.msra.mxu2 %v1889_v58  ;;  %1395 = vmatpush.bf16.msrb.mxu3 %v1837_v12  ;;  %v2111_v58 = vld [vmem:[#allocation10 + $0x188] sm:$0xf0]  ;;  %v1973_v14 = vor.u32 %v2122_v7, %v1970_v11  ;;  %v1748_v11 = vld [vmem:[#allocation10 + $0x20] sm:$0xf] }
  0xab   :  { %1418 = vmatpush.bf16.msra.mxu1 %v1781_v18  ;;  %v2106_v18 = vld [vmem:[#allocation10 + $0x160] sm:$0xf0] }
  0xac   :  { %1431 = vmatpush.bf16.msra.mxu2 %v1877_v5  ;;  %v1905_v20 = vor.u32 %v2106_v18, %v1904_v17  ;;  %1396 = vmatpush.bf16.msrb.mxu3 %v1825_v24  ;;  %v2097_v5 = vld [vmem:[#allocation10 + $0x118] sm:$0xf0]  ;;  %v1856_v17 = vld [vmem:[#allocation10 + $0xf8] sm:$0xf] }
  0xad   :  { %807 = vmatmul.bf16.vlgmr.msrb.gmra.mxu0 %v417_v61  ;;  %820 = vmatmul.bf16.vlgmr.msrb.gmra.mxu1 %v418_v62  ;;  %v1968_v61 = vld [vmem:[#allocation10 + $0x1e0] sm:$0xf]  ;;  %v2123_v62 = vld [vmem:[#allocation10 + $0x1e8] sm:$0xf0]  ;;  %v1958_v24 = vld [vmem:[#allocation10 + $0x1d4] sm:$0xf0] }
  0xae   :  { %v1969_v0 = vor.u32 %v2123_v62, %v1968_v61  ;;  %v1921_v61 = vor.u32 %v2111_v58, %v1920_v57  ;;  %v1826_v62 = vld [vmem:[#allocation10 + $0xcc] sm:$0xf0]  ;;  %v1961_v25 = vor.u32 %v2119_v22, %v1958_v24  ;;  %v2064_v22 = vld [vmem:[#allocation10 + $0x10] sm:$0xf0] }
  0xaf   :  { %1419 = vmatpush.bf16.msra.mxu1 %v1769_v33  ;;  %v1850_v33 = vld [vmem:[#allocation10 + $0xfc] sm:$0xf0]  ;;  %v1829_v60 = vor.u32 %v2086_v59, %v1826_v62  ;;  %v1922_v62 = vld [vmem:[#allocation10 + $0x18c] sm:$0xf0] }
  0xb0   :  { %1405 = vmatpush.bf16.msra.mxu0 %v1969_v0  ;;  %1432 = vmatpush.bf16.msra.mxu2 %v1865_v19  ;;  %v1853_v36 = vor.u32 %v2092_v31, %v1850_v33  ;;  %v2085_v0 = vld [vmem:[#allocation10 + $0xb8] sm:$0xf0]  ;;  %v2094_v19 = vld [vmem:[#allocation10 + $0x100] sm:$0xf0]  ;;  %v487_v31 = vperm.slane %v2429_v23, 2 }
  0xb1   :  { %1441 = vmatpush.bf16.msra.mxu3 %v2009_v28  ;;  %v1821_v3 = vor.u32 %v2085_v0, %v1820_v63  ;;  %v1857_v21 = vor.u32 %v2094_v19, %v1856_v17  ;;  %v1796_v28 = vld [vmem:[#allocation10 + $0x80] sm:$0xf]  ;;  %v1760_v63 = vld [vmem:[#allocation10 + $0x38] sm:$0xf] }
  0xb2   :  { %v1844_v33 = vld [vmem:[#allocation10 + $0xe0] sm:$0xf] }
  0xb3   :  { %1420 = vmatpush.bf16.msra.mxu1 %v1757_v43 }
  0xb4   :  { %1406 = vmatpush.bf16.msra.mxu0 %v1957_v15  ;;  %1433 = vmatpush.bf16.msra.mxu2 %v1853_v36  ;;  %v1808_v15 = vld [vmem:[#allocation10 + $0x98] sm:$0xf]  ;;  %v2116_v36 = vld [vmem:[#allocation10 + $0x1b4] sm:$0xf] }
  0xb5   :  { %1442 = vmatpush.bf16.msra.mxu3 %v1997_v39  ;;  %v1809_v18 = vor.u32 %v2082_v16, %v1808_v15  ;;  %v1949_v42 = vor.u32 %v2116_v36, %v1946_v26  ;;  %v2133_v15 = vld [vmem:[#allocation10 + $0x238] sm:$0xf0]  ;;  %v2130_v36 = vld [vmem:[#allocation10 + $0x220] sm:$0xf0] }
  0xb7   :  { %1421 = vmatpush.bf16.msra.mxu1 %v1745_v54  ;;  %v1982_v54 = vld [vmem:[#allocation10 + $0x204] sm:$0xf0] }
  0xb8   :  { %1407 = vmatpush.bf16.msra.mxu0 %v1945_v32  ;;  %v1985_v56 = vor.u32 %v2125_v53, %v1982_v54  ;;  %1434 = vmatpush.bf16.msra.mxu2 %v1841_v50  ;;  %v1797_v32 = vor.u32 %v2079_v29, %v1796_v28  ;;  %v1934_v50 = vld [vmem:[#allocation10 + $0x1a4] sm:$0xf0]  ;;  %v1772_v53 = vld [vmem:[#allocation10 + $0x50] sm:$0xf]  ;;  %v2073_v54 = vld [vmem:[#allocation10 + $0x58] sm:$0xf0] }
  0xb9   :  { %v1773_v58 = vor.u32 %v2073_v54, %v1772_v53 }
  0xba   :  { %1443 = vmatpush.bf16.msra.mxu3 %v1985_v56 }
  0xbb   :  { %1422 = vmatpush.bf16.msra.mxu1 %v1733_v4  ;;  %v1868_v4 = vld [vmem:[#allocation10 + $0x110] sm:$0xf] }
  0xbc   :  { %1408 = vmatpush.bf16.msra.mxu0 %v1933_v45  ;;  %v1869_v6 = vor.u32 %v2097_v5, %v1868_v4  ;;  %1435 = vmatpush.bf16.msra.mxu2 %v1829_v60  ;;  %v2088_v45 = vld [vmem:[#allocation10 + $0xd0] sm:$0xf0] }
  0xbe   :  { %1444 = vmatpush.bf16.msra.mxu3 %v1973_v14  ;;  %v2012_v14 = vld [vmem:[#allocation10 + $0x230] sm:$0xf] }
  0xbf   :  { %1467 = vmatpush.bf16.msrb.mxu1 %v1917_v10 }
  0xc0   :  { %1409 = vmatpush.bf16.msra.mxu0 %v1921_v61  ;;  %v2110_v61 = vld [vmem:[#allocation10 + $0x184] sm:$0xf] }
  0xc1   :  { %v1925_v4 = vor.u32 %v2110_v61, %v1922_v62 }
  0xc2   :  { %1445 = vmatpush.bf16.msra.mxu3 %v1961_v25 }
  0xc3   :  { %1468 = vmatpush.bf16.msrb.mxu1 %v1905_v20 }
  0xc4   :  { %1454 = vmatpush.bf16.msrb.mxu0 %v1821_v3 }
  0xc6   :  { %1446 = vmatpush.bf16.msra.mxu3 %v1949_v42 }
  0xc7   :  { %1469 = vmatpush.bf16.msrb.mxu1 %v1893_v37 }
  0xc8   :  { %1455 = vmatpush.bf16.msrb.mxu0 %v1809_v18 }
  0xcb   :  { %1470 = vmatpush.bf16.msrb.mxu1 %v1881_v51 }
  0xcc   :  { %1456 = vmatpush.bf16.msrb.mxu0 %v1797_v32  ;;  %v2013_v32 = vor.u32 %v2133_v15, %v2012_v14 }
  0xcf   :  { %1471 = vmatpush.bf16.msrb.mxu1 %v1869_v6 }
  0xd3   :  { %1472 = vmatpush.bf16.msrb.mxu1 %v1857_v21  ;;  %v1736_v21 = vld [vmem:[#allocation10 + $0x8] sm:$0xf] }
  0xd4   :  { %v1737_v29 = vor.u32 %v2064_v22, %v1736_v21 }
 0x11a   :  { %v756_v43 = vpop.f32.mrf.mxu0  ;;  %v769_v44 = vpop.f32.mrf.mxu1 }
 0x11b   :  { %v757_v49 = vadd.f32 %v756_v43, %v485_v35  ;;  %v1845_v35 = vor.u32 %v2091_v34, %v1844_v33  ;;  %v2076_v43 = vld [vmem:[#allocation10 + $0x70] sm:$0xf0] }
 0x11c   :  { %v1785_v46 = vor.u32 %v2076_v43, %v1784_v41  ;;  %v1988_v41 = vld [vmem:[#allocation10 + $0x200] sm:$0xf] }
 0x11d   :  { %v2433_v55 = vadd.f32 %v769_v44, %v757_v49  ;;  %1473 = vmatpush.bf16.msrb.mxu1 %v1845_v35  ;;  %v1832_v44 = vld [vmem:[#allocation10 + $0xc8] sm:$0xf]  ;;  %v2113_v49 = vld [vmem:[#allocation10 + $0x19c] sm:$0xf]  ;;  %v2000_v35 = vld [vmem:[#allocation10 + $0x218] sm:$0xf] }
 0x11e   :  { %v1833_v47 = vor.u32 %v2088_v45, %v1832_v44  ;;  %1457 = vmatpush.bf16.msrb.mxu0 %v1785_v46  ;;  %v2001_v26 = vor.u32 %v2130_v36, %v2000_v35 }
 0x11f   :  { %v1723_v2 = vmul.f32 -1.442695, %v2433_v55 }
 0x121   :  { %2149 = vpow2.f32 %v1723_v2  ;;  %v782_v9 = vpop.f32.mrf.mxu2  ;;  %v795_v10 = vpop.f32.mrf.mxu3  ;;  %1474 = vmatpush.bf16.msrb.mxu1 %v1833_v47  ;;  %v2070_v2 = vld [vmem:[#allocation10 + $0x40] sm:$0xf0] }
 0x122   :  { %v783_v12 = vadd.f32 %v782_v9, %v486_v52  ;;  %v758_v13 = vpop.f32.mrf.mxu0  ;;  %v771_v1 = vpop.f32.mrf.mxu1  ;;  %v1937_v52 = vor.u32 %v2113_v49, %v1934_v50  ;;  %1458 = vmatpush.bf16.msrb.mxu0 %v1773_v58  ;;  %v1761_v6 = vor.u32 %v2070_v2, %v1760_v63  ;;  %v1976_v49 = vld [vmem:[#allocation10 + $0x1e8] sm:$0xf]  ;;  %v2124_v50 = vld [vmem:[#allocation10 + $0x1f0] sm:$0xf0]  ;;  %v1952_v63 = vld [vmem:[#allocation10 + $0x1b8] sm:$0xf] }
 0x123   :  { %v1977_v54 = vor.u32 %v2124_v50, %v1976_v49 }
 0x124   :  { %v2436_v20 = vadd.f32 %v795_v10, %v783_v12  ;;  %1447 = vmatpush.bf16.msra.mxu3 %v1937_v52  ;;  %v2067_v12 = vld [vmem:[#allocation10 + $0x28] sm:$0xf0] }
 0x125   :  { %v1749_v16 = vor.u32 %v2067_v12, %v1748_v11 }
 0x126   :  { %v1724_v27 = vmul.f32 -1.442695, %v2436_v20  ;;  %1459 = vmatpush.bf16.msrb.mxu0 %v1761_v6  ;;  %v1928_v6 = vld [vmem:[#allocation10 + $0x188] sm:$0xf] }
 0x127   :  { %v2150_v30 = vpop.eup %2149 }
 0x128   :  { %v2440_v8 = vadd.f32 1.0, %v2150_v30  ;;  %2151 = vpow2.f32 %v1724_v27  ;;  %1448 = vmatpush.bf16.msra.mxu3 %v1925_v4  ;;  %v2115_v4 = vld [vmem:[#allocation10 + $0x1a8] sm:$0xf0] }
 0x129   :  { %v784_v37 = vpop.f32.mrf.mxu2  ;;  %v797_v38 = vpop.f32.mrf.mxu3 }
 0x12a   :  { %2153 = vrcp.f32 %v2440_v8  ;;  %v808_v39 = vpop.f32.mrf.mxu0  ;;  %v821_v40 = vpop.f32.mrf.mxu1  ;;  %v848_v7 = vand.u32 2147483648, %v2440_v8  ;;  %v846_v10 = vand.u32 2147483647, %v2440_v8  ;;  %vm842_vm7 = vweird.f32 %v2440_v8  ;;  %1460 = vmatpush.bf16.msrb.mxu0 %v1749_v16 }
 0x12b   :  { %v809_v23 = vadd.f32 %v808_v39, %v487_v31 }
 0x12c   :  { %v849_v18 = vor.u32 1.1754944e-38, %v848_v7  ;;  %vm847_vm9 = vcmp.eq.f32.partialorder %v846_v10, 8.507059e+37  ;;  %v2112_v7 = vld [vmem:[#allocation10 + $0x190] sm:$0xf0] }
 0x12d   :  { %v2443_v48 = vadd.f32 %v821_v40, %v809_v23  ;;  %v2127_v23 = vld [vmem:[#allocation10 + $0x208] sm:$0xf0] }
 0x12e   :  { %v2152_v51 = vpop.eup %2151  ;;  %1461 = vmatpush.bf16.msrb.mxu0 %v1737_v29  ;;  %v1989_v46 = vor.u32 %v2127_v23, %v1988_v41 }
 0x12f   :  { %v2445_v56 = vadd.f32 1.0, %v2152_v51  ;;  %v1725_v57 = vmul.f32 -1.442695, %v2443_v48 }
 0x130   :  { %v2154_v59 = vpop.eup %2153 }
 0x131   :  { %v838_v0 = vmul.f32 %v2154_v59, %v2440_v8  ;;  %2155 = vrcp.f32 %v2445_v56  ;;  %vm843_vm6 = vweird.f32 %v2154_v59  ;;  %v863_v31 = vand.u32 2147483648, %v2445_v56 }
 0x132   :  { %2157 = vpow2.f32 %v1725_v57  ;;  %v810_v60 = vpop.f32.mrf.mxu0  ;;  %v823_v3 = vpop.f32.mrf.mxu1  ;;  %vm844_vm8 = vmor %vm842_vm7, %vm843_vm6  ;;  %vm857_vm10 = vweird.f32 %v2445_v56  ;;  %v861_v34 = vand.u32 2147483647, %v2445_v56  ;;  %v1964_v57 = vld [vmem:[#allocation10 + $0x1d0] sm:$0xf] }
 0x133   :  { %v839_v5 = vsub.f32 1.0, %v838_v0  ;;  %v864_v38 = vor.u32 1.1754944e-38, %v863_v31  ;;  %v2118_v0 = vld [vmem:[#allocation10 + $0x1c0] sm:$0xf0]  ;;  %v1940_v3 = vld [vmem:[#allocation10 + $0x1a0] sm:$0xf] }
 0x134   :  { %vm862_vm13 = vcmp.eq.f32.partialorder %v861_v34, 8.507059e+37  ;;  %v1953_v60 = vor.u32 %v2118_v0, %v1952_v63 }
 0x135   :  { %v840_v9 = vmul.f32 %v2154_v59, %v839_v5  ;;  %v1941_v5 = vor.u32 %v2115_v4, %v1940_v3 }
 0x137   :  { %v2156_v13 = vpop.eup %2155  ;;  %v841_v1 = vadd.f32 %v2154_v59, %v840_v9  ;;  %v1929_v9 = vor.u32 %v2112_v7, %v1928_v6 }
 0x138   :  { %v2158_v17 = vpop.eup %2157  ;;  %v853_v19 = vmul.f32 %v2156_v13, %v2445_v56  ;;  %vm858_vm11 = vweird.f32 %v2156_v13 }
 0x139   :  { %v845_v24 = vsel %vm844_vm8, %v2154_v59, %v841_v1  ;;  %v836_v25 = vadd.f32 1.0, %v2158_v17  ;;  %vm859_vm12 = vmor %vm857_vm10, %vm858_vm11  ;;  %v984_v17 = vld [vmem:[%s2471_s5] sm:$0x7]  ;;  %s2317_s5 = smov [#allocation12]  }
 0x13a   :  { %v850_v27 = vsel %vm847_vm9, %v849_v18, %v845_v24  ;;  %v854_v28 = vsub.f32 1.0, %v853_v19  ;;  %v987_v21 = vperm.slane %v984_v17, 1  ;;  %s1509_s22 = sshll.u32 %s2317_s5, 4  ;;  %s1510_s22 = int_to_ptr.vmem [resolvable:$true] %s1509_s22 }
 0x13b   :  { %v882_v30 = vmul.f32 %v850_v27, %v2433_v55  ;;  %2159 = vrcp.f32 %v836_v25  ;;  %v878_v47 = vand.u32 2147483648, %v836_v25  ;;  %v876_v52 = vand.u32 2147483647, %v836_v25 }
 0x13c   :  { %v855_v33 = vmul.f32 %v2156_v13, %v854_v28  ;;  %vm872_vm15 = vweird.f32 %v836_v25  ;;  %v988_v27 = vperm.slane %v984_v17, 2  ;;  %v986_v28 = vperm.slane %v984_v17, 0 }
 0x13d   :  { %v885_v8 = vpack.c.bf16 %v882_v30, %v882_v30  ;;  %v879_v56 = vor.u32 1.1754944e-38, %v878_v47  ;;  %vm877_vm1 = vcmp.eq.f32.partialorder %v876_v52, 8.507059e+37 }
 0x13e   :  { %v856_v37 = vadd.f32 %v2156_v13, %v855_v33 }
 0x13f   :  { %1384 = vmatmul.bf16.vlgmr.msrb.gmra.mxu2 %v885_v8  ;;  %1423 = vmatmul.bf16.vlgmr.msra.gmra.mxu1 %v885_v8 }
 0x140   :  { %v860_v55 = vsel %vm859_vm12, %v2156_v13, %v856_v37  ;;  %1480 = vmatpush.bf16.msrb.mxu2 %v2013_v32 }
 0x141   :  { %v2160_v39 = vpop.eup %2159  ;;  %v865_v40 = vsel %vm862_vm13, %v864_v38, %v860_v55 }
 0x142   :  { %v883_v42 = vmul.f32 %v865_v40, %v2436_v20  ;;  %v868_v43 = vmul.f32 %v2160_v39, %v836_v25  ;;  %vm873_vm14 = vweird.f32 %v2160_v39  ;;  %v2121_v20 = vld [vmem:[#allocation10 + $0x1d8] sm:$0xf0] }
 0x143   :  { %vm874_vm0 = vmor %vm872_vm15, %vm873_vm14  ;;  %v1965_v62 = vor.u32 %v2121_v20, %v1964_v57 }
 0x144   :  { %v886_v44 = vpack.c.bf16 %v883_v42, %v883_v42  ;;  %v869_v45 = vsub.f32 1.0, %v868_v43  ;;  %1481 = vmatpush.bf16.msrb.mxu2 %v2001_v26 }
 0x146   :  { %v870_v51 = vmul.f32 %v2160_v39, %v869_v45  ;;  %1397 = vmatmul.bf16.vlgmr.msrb.gmra.mxu3 %v886_v44 }
 0x148   :  { %v871_v53 = vadd.f32 %v2160_v39, %v870_v51  ;;  %1482 = vmatpush.bf16.msrb.mxu2 %v1989_v46 }
 0x14a   :  { %v875_v58 = vsel %vm874_vm0, %v2160_v39, %v871_v53 }
 0x14b   :  { %v880_v59 = vsel %vm877_vm1, %v879_v56, %v875_v58 }
 0x14c   :  { %v884_v61 = vmul.f32 %v880_v59, %v2443_v48  ;;  %1483 = vmatpush.bf16.msrb.mxu2 %v1977_v54 }
 0x14e   :  { %v887_v2 = vpack.c.bf16 %v884_v61, %v884_v61 }
 0x14f   :  { %1436 = vmatmul.bf16.vlgmr.msra.gmra.mxu2 %v886_v44  ;;  %1475 = vmatmul.bf16.vlgmr.msrb.gmra.mxu1 %v886_v44 }
 0x150   :  { %1410 = vmatmul.bf16.vlgmr.msra.gmra.mxu0 %v887_v2  ;;  %1484 = vmatpush.bf16.msrb.mxu2 %v1965_v62 }
 0x154   :  { %1485 = vmatpush.bf16.msrb.mxu2 %v1953_v60 }
 0x156   :  { %1449 = vmatmul.bf16.vlgmr.msra.gmra.mxu3 %v887_v2 }
 0x158   :  { %1486 = vmatpush.bf16.msrb.mxu2 %v1941_v5 }
 0x15c   :  { %1487 = vmatpush.bf16.msrb.mxu2 %v1929_v9 }
 0x15f   :  { %1488 = vmatmul.bf16.vlgmr.msrb.gmra.mxu2 %v887_v2 }
 0x160   :  { %1462 = vmatmul.bf16.vlgmr.msrb.gmra.mxu0 %v885_v8 }
 0x1bc   :  { %v1424_v48 = vpop.f32.mrf.mxu1 }
 0x1bd   :  { %v1425_v24 = vadd.f32 %v1424_v48, %v987_v21 }
 0x1c2   :  { %v1385_v10 = vpop.f32.mrf.mxu2 }
 0x1c3   :  { %v1386_v33 = vadd.f32 %v1385_v10, %v986_v28 }
 0x1c4   :  { %v1426_v11 = vpop.f32.mrf.mxu1 }
 0x1c9   :  { %v1398_v12 = vpop.f32.mrf.mxu3 }
 0x1ca   :  { %v1387_v13 = vpop.f32.mrf.mxu2  ;;  %v1399_v35 = vadd.f32 %v1398_v12, %v1386_v33 }
 0x1cc   :  { %v1476_v1 = vpop.f32.mrf.mxu1 }
 0x1cd   :  { %v1411_v14 = vpop.f32.mrf.mxu0 }
 0x1ce   :  { %v1412_v55 = vadd.f32 %v1411_v14, %v1399_v35 }
 0x1d1   :  { %v1400_v15 = vpop.f32.mrf.mxu3 }
 0x1d2   :  { %v1437_v16 = vpop.f32.mrf.mxu2 }
 0x1d3   :  { %v1438_v29 = vadd.f32 %v1437_v16, %v1425_v24 }
 0x1d4   :  { %v1478_v18 = vpop.f32.mrf.mxu1 }
 0x1d5   :  { %v1413_v19 = vpop.f32.mrf.mxu0 }
 0x1d9   :  { %v1450_v22 = vpop.f32.mrf.mxu3 }
 0x1da   :  { %v1439_v25 = vpop.f32.mrf.mxu2  ;;  %v1451_v31 = vadd.f32 %v1450_v22, %v1438_v29 }
 0x1dc   :  { %v1496_v36 = vrot.slane %v1451_v31, 6 }
 0x1dd   :  { %v1463_v30 = vpop.f32.mrf.mxu0 }
 0x1de   :  { %v1464_v32 = vadd.f32 %v1463_v30, %v988_v27  ;;  %v1499_v40 = vsel %vm1498_vm2, %v1412_v55, %v1496_v36 }
 0x1e0   :  { %v1477_v8 = vadd.f32 %v1476_v1, %v1464_v32 }
 0x1e1   :  { %v1452_v34 = vpop.f32.mrf.mxu3 }
 0x1e2   :  { %v1489_v37 = vpop.f32.mrf.mxu2 }
 0x1e3   :  { %v1490_v38 = vadd.f32 %v1489_v37, %v1477_v8 }
 0x1e5   :  { %v1497_v26 = vrot.slane %v1490_v38, 4  ;;  %v1465_v39 = vpop.f32.mrf.mxu0 }
 0x1e7   :  { %v1501_v41 = vsel %vm1500_vm3, %v1499_v40, %v1497_v26 }
 0x1e8   :  { %1503 = vst [vmem:[#allocation12] sm:$0x3f] %v1501_v41 }
 0x1e9   :  { %1514 = dma.vmem_to_hbm [thread:$0]  %s1510_s22, 96, %s1512_s25, [#allocation4]  }
 0x1ea   :  { %v1491_v23 = vpop.f32.mrf.mxu2 }
 0x1eb   :  { %2301 = dma.done.wait [#allocation4], 96  }
 0x1ec   :  { %2302 = vsyncadd [#allocation4], 4294967200 }
 0x1ed   :  { %1519 = vsyncpa [#allocation3], 1 }
 0x1ee   :  { %1520 = vsyncpa [#allocation8], 1 }
 0x1ef   :  { %1521 = vsyncpa [#allocation11], 1 }
 0x1f0   :  { %1522 = vsyncpa [#allocation4], 1 }
 0x1f1   :  { %1523 = vsyncpa [#allocation5], 1 }

</bundles_post_ra>
